<compile_context>
chip_gen: v5e
topology: v5e:2x2
jax: 0.10.0
libtpu: 0.0.40
codegen_flags: <defaults>
</compile_context>

<pallas_src>
import functools

import jax
import jax.numpy as jnp
from jax.experimental import pallas as pl
from jax.experimental.pallas import tpu as pltpu

LANE = 128            # lane alignment (128 fine at these widths; 256 for wide layers on v6e/v7x)
SUBLANE = 16          # bf16 sublane packing -> keep batch tiles multiples of 16
MXU_DTYPE = jnp.bfloat16   # MXU operand dtype; epilogue stays f32


def _round_up(n, m):
    return ((n + m - 1) // m) * m


# ---------------------------------------------------------------------------
# Fused Pallas kernel (built per static layer count)
# ---------------------------------------------------------------------------
def _make_fused_fc_kernel(num_layers, mxu_dtype):
    """Kernel refs: (x, w0, b0, w1, b1, ..., w_{L-1}, b_{L-1}, out).

    Hidden nonlinearity f = ReLU; final layer is softmax over dim 1.
    Padded logit lanes carry a -inf bias so they contribute exp(-inf)=0.
    """

    def kernel(*refs):
        x_ref, o_ref = refs[0], refs[-1]
        params = refs[1:-1]

        s = x_ref[...]
        if s.dtype != mxu_dtype:
            s = s.astype(mxu_dtype)

        # Hidden layers: matmul (bf16 operands, f32 accumulate) + bias + ReLU,
        # kept entirely on-chip.
        for li in range(num_layers - 1):
            w = params[2 * li][...]              # bf16, resident in VMEM
            b = params[2 * li + 1][...]          # f32 (1, hid_p), broadcasts over batch
            z = jnp.dot(s, w, preferred_element_type=jnp.float32)
            s = jnp.maximum(z + b, 0.0).astype(mxu_dtype)

        # Output layer: matmul + bias + numerically stable softmax (f32 epilogue).
        w = params[-2][...]
        b = params[-1][...]                      # padded lanes are -inf
        z = jnp.dot(s, w, preferred_element_type=jnp.float32) + b
        z = z - jnp.max(z, axis=-1, keepdims=True)
        e = jnp.exp(z)
        denom = jnp.sum(e, axis=-1, keepdims=True)
        inv = pl.reciprocal(denom, approx=True)  # EUP vrcp
        inv = inv * (2.0 - denom * inv)          # one Newton step -> ~exact row sums
        o_ref[...] = e * inv

    return kernel


# ---------------------------------------------------------------------------
# Parameter padding (lane-dense layout, bf16 weights)
# ---------------------------------------------------------------------------
def pad_params_for_lanes(weights, biases, mxu_dtype=MXU_DTYPE):
    """Pad each layer's in/out dims to multiples of 128 lanes.

    * Layer 0 input dim is also padded (matches the zero-padded x columns).
    * Hidden layers: zero weight cols / zero bias lanes -> padded activations
      are ReLU(0)=0 and meet zero weight rows downstream.
    * Final layer: padded bias lanes are -inf so padded logits vanish in softmax.
    * Weights cast to bf16 AFTER padding; zero padding stays exactly 0 in bf16.
      Biases stay f32 (used in the f32 epilogue; -inf stays exact).
    """
    padded_w, padded_b = [], []
    prev_p = _round_up(weights[0].shape[0], LANE)
    for li, (w, b) in enumerate(zip(weights, biases)):
        in_dim, out_dim = w.shape
        out_p = _round_up(out_dim, LANE)
        w_p = jnp.zeros((prev_p, out_p), dtype=jnp.float32)
        w_p = w_p.at[:in_dim, :out_dim].set(w.astype(jnp.float32))
        w_p = w_p.astype(mxu_dtype)
        fill = -jnp.inf if li == len(weights) - 1 else 0.0
        b_p = jnp.full((1, out_p), fill, dtype=jnp.float32)
        b_p = b_p.at[:, :out_dim].set(b.reshape(1, out_dim).astype(jnp.float32))
        padded_w.append(w_p)
        padded_b.append(b_p)
        prev_p = out_p
    return padded_w, padded_b


def _default_block_batch(batch):
    """<=256-row activation tiles, at least 2 grid steps when batch allows
    (software pipelining + v7x 2-TC sharding), multiples of 16 sublanes."""
    if batch <= SUBLANE:
        return SUBLANE
    half = _round_up((batch + 1) // 2, SUBLANE)
    return min(256, half)


# ---------------------------------------------------------------------------
# Fused forward pass
# ---------------------------------------------------------------------------
@functools.partial(jax.jit, static_argnames=("out_dim", "block_batch", "buffer_params"))
def fc_forward_fused(x, padded_w, padded_b, *, out_dim, block_batch=None,
                     buffer_params=True):
    num_layers = len(padded_w)
    batch, in_dim = x.shape
    in_p = padded_w[0].shape[0]
    out_p = padded_w[-1].shape[1]

    if block_batch is None:
        block_batch = _default_block_batch(batch)
    batch_p = _round_up(batch, block_batch)

    # Lane-dense bf16 input tile: pad feature dim to in_p, batch to tile multiple.
    x_p = jnp.zeros((batch_p, in_p), dtype=MXU_DTYPE)
    x_p = x_p.at[:batch, :in_dim].set(x.astype(MXU_DTYPE))

    grid = (batch_p // block_batch,)

    x_spec = pl.BlockSpec((block_batch, in_p), lambda i: (i, 0))
    out_spec = pl.BlockSpec((block_batch, out_p), lambda i: (i, 0))

    # Resident params: constant index_map; single buffer (block never changes).
    pmode = dict(pipeline_mode=pl.Buffered(1)) if buffer_params else {}
    params, param_specs = [], []
    for w_p, b_p in zip(padded_w, padded_b):
        param_specs.append(pl.BlockSpec(w_p.shape, lambda i: (0, 0), **pmode))
        param_specs.append(pl.BlockSpec(b_p.shape, lambda i: (0, 0), **pmode))
        params.extend([w_p, b_p])

    # Advisory cost estimate for XLA's scheduler.
    flops = sum(2 * batch_p * w_p.shape[0] * w_p.shape[1] for w_p in padded_w)
    transcendentals = batch_p * (out_p + 1)        # exp per logit + 1 recip per row
    bytes_accessed = (x_p.size * x_p.dtype.itemsize
                      + sum(int(p.size) * p.dtype.itemsize for p in params)
                      + batch_p * out_p * 4)

    # Explicit VMEM budget: resident params + double-buffered x/out tiles
    # (+ headroom), capped below v7x's 64 MiB physical VMEM.
    param_bytes = sum(int(p.size) * p.dtype.itemsize for p in params)
    tile_bytes = (2 * block_batch * in_p * x_p.dtype.itemsize
                  + 2 * block_batch * out_p * 4)
    vmem_limit = int(min(max(2 * (param_bytes + tile_bytes) + (4 << 20), 16 << 20),
                         48 << 20))

    probs_padded = pl.pallas_call(
        _make_fused_fc_kernel(num_layers, MXU_DTYPE),
        out_shape=jax.ShapeDtypeStruct((batch_p, out_p), jnp.float32),
        grid_spec=pltpu.PrefetchScalarGridSpec(
            num_scalar_prefetch=0,
            grid=grid,
            in_specs=[x_spec] + param_specs,
            out_specs=out_spec,
        ),
        compiler_params=pltpu.CompilerParams(
            dimension_semantics=("parallel",),
            vmem_limit_bytes=vmem_limit,
        ),
        cost_estimate=pl.CostEstimate(
            flops=int(flops),
            transcendentals=int(transcendentals),
            bytes_accessed=int(bytes_accessed),
        ),
    )(x_p, *params)

    return probs_padded[:batch, :out_dim]


# ---------------------------------------------------------------------------
# Parameter init (mirrors FCmodel.__init__) and pure-JAX reference
# ---------------------------------------------------------------------------
def init_fc_params(key, neurons):
    weights, biases = [], []
    for i in range(len(neurons) - 1):
        key, sub = jax.random.split(key)
        weights.append(
            jax.random.normal(sub, (neurons[i], neurons[i + 1]), dtype=jnp.float32)
        )
        biases.append(jnp.zeros((neurons[i + 1],), dtype=jnp.float32))
    return weights, biases


def fc_forward_ref(x, weights, biases, mxu_dtype=jnp.float32):
    """Pure-JAX reference; mxu_dtype mirrors the kernel's matmul-operand precision."""
    s = x.astype(jnp.float32)
    for wi, bi in zip(weights[:-1], biases[:-1]):
        z = jnp.dot(s.astype(mxu_dtype), wi.astype(mxu_dtype),
                    preferred_element_type=jnp.float32)
        s = jnp.maximum(z + bi.reshape(1, -1), 0.0)
    logits = jnp.dot(s.astype(mxu_dtype), weights[-1].astype(mxu_dtype),
                     preferred_element_type=jnp.float32) + biases[-1].reshape(1, -1)
    return jax.nn.softmax(logits, axis=1)


if __name__ == "__main__":
    # Small layer widths (neurons=(32, 64, 16)); batch=256 so the batch grid has
    # two 128-row steps (pipelining + TC sharding are exercised).
    neurons = (32, 64, 16)
    batch = 256

    key = jax.random.PRNGKey(0)
    key_x, key_p = jax.random.split(key)

    x = jax.random.normal(key_x, (batch, neurons[0]), dtype=jnp.float32)
    weights, biases = init_fc_params(key_p, neurons)

    # Pad once (outside the per-call path): lane-dense bf16 weights, f32 biases.
    padded_w, padded_b = pad_params_for_lanes(weights, biases)

    try:
        probs = fc_forward_fused(x, padded_w, padded_b, out_dim=neurons[-1])
        probs = jax.block_until_ready(probs)
    except Exception:
        # Fallback if this JAX build rejects pipeline_mode=pl.Buffered(1).
        probs = fc_forward_fused(x, padded_w, padded_b, out_dim=neurons[-1],
                                 buffer_params=False)
        probs = jax.block_until_ready(probs)

    # Correctness vs a reference using the same matmul-operand precision
    # (bf16 operands, f32 accumulation + f32 epilogue) so the check isolates
    # kernel bugs from the intended bf16 quantization of the matmuls.
    ref = fc_forward_ref(x, weights, biases, mxu_dtype=MXU_DTYPE)
    assert probs.shape == (batch, neurons[-1])
    assert jnp.allclose(probs, ref, atol=2e-3, rtol=2e-3), "mismatch vs reference"
    assert jnp.allclose(jnp.sum(probs, axis=1), 1.0, atol=1e-3)

    print("KERNEL_OK")
</pallas_src>

<mosaic_0001>
module attributes {stable_mosaic.version = 11 : i64} {
  func.func @kernel(%arg0: i32, %arg1: memref<128x128xbf16, #tpu.memory_space<vmem>>, %arg2: memref<128x128xbf16, #tpu.memory_space<vmem>>, %arg3: memref<1x128xf32, #tpu.memory_space<vmem>>, %arg4: memref<128x128xbf16, #tpu.memory_space<vmem>>, %arg5: memref<1x128xf32, #tpu.memory_space<vmem>>, %arg6: memref<128x128xf32, #tpu.memory_space<vmem>>) attributes {dimension_semantics = [#tpu.dimension_semantics<parallel>], iteration_bounds = array<i64: 2>, scalar_prefetch = 0 : i64, scratch_operands = 0 : i64, tpu.core_type = #tpu.core_type<tc>, window_params = [{transform_indices = @transform_0, window_bounds = array<i64: 128, 128>}, {pipeline_mode = #tpu.pipeline_mode<synchronous>, transform_indices = @transform_1, window_bounds = array<i64: 128, 128>}, {pipeline_mode = #tpu.pipeline_mode<synchronous>, transform_indices = @transform_2, window_bounds = array<i64: 1, 128>}, {pipeline_mode = #tpu.pipeline_mode<synchronous>, transform_indices = @transform_3, window_bounds = array<i64: 128, 128>}, {pipeline_mode = #tpu.pipeline_mode<synchronous>, transform_indices = @transform_4, window_bounds = array<i64: 1, 128>}, {transform_indices = @transform_5, window_bounds = array<i64: 128, 128>}]} {
    %c0 = arith.constant 0 : index
    %c0_0 = arith.constant 0 : index
    %0 = vector.load %arg1[%c0, %c0_0] : memref<128x128xbf16, #tpu.memory_space<vmem>>, vector<128x128xbf16>
    %c0_1 = arith.constant 0 : index
    %c0_2 = arith.constant 0 : index
    %1 = vector.load %arg2[%c0_1, %c0_2] : memref<128x128xbf16, #tpu.memory_space<vmem>>, vector<128x128xbf16>
    %c0_3 = arith.constant 0 : index
    %c0_4 = arith.constant 0 : index
    %2 = vector.load %arg3[%c0_3, %c0_4] : memref<1x128xf32, #tpu.memory_space<vmem>>, vector<1x128xf32>
    %cst = arith.constant dense<0.000000e+00> : vector<128x128xf32>
    %3 = tpu.matmul %0, %1, %cst {dimension_numbers = #tpu.dot_dimension_numbers<[1], [0], [0], [1], [0, 0, 1, 1], [], []>} : vector<128x128xbf16>, vector<128x128xbf16>, vector<128x128xf32> -> vector<128x128xf32>
    %4 = vector.broadcast %2 : vector<1x128xf32> to vector<128x128xf32>
    %5 = arith.addf %3, %4 : vector<128x128xf32>
    %cst_5 = arith.constant 0.000000e+00 : f32
    %6 = vector.broadcast %cst_5 : f32 to vector<128x128xf32>
    %7 = arith.maximumf %5, %6 : vector<128x128xf32>
    %8 = arith.truncf %7 : vector<128x128xf32> to vector<128x128xbf16>
    %c0_6 = arith.constant 0 : index
    %c0_7 = arith.constant 0 : index
    %9 = vector.load %arg4[%c0_6, %c0_7] : memref<128x128xbf16, #tpu.memory_space<vmem>>, vector<128x128xbf16>
    %c0_8 = arith.constant 0 : index
    %c0_9 = arith.constant 0 : index
    %10 = vector.load %arg5[%c0_8, %c0_9] : memref<1x128xf32, #tpu.memory_space<vmem>>, vector<1x128xf32>
    %cst_10 = arith.constant dense<0.000000e+00> : vector<128x128xf32>
    %11 = tpu.matmul %8, %9, %cst_10 {dimension_numbers = #tpu.dot_dimension_numbers<[1], [0], [0], [1], [0, 0, 1, 1], [], []>} : vector<128x128xbf16>, vector<128x128xbf16>, vector<128x128xf32> -> vector<128x128xf32>
    %12 = vector.broadcast %10 : vector<1x128xf32> to vector<128x128xf32>
    %13 = arith.addf %11, %12 : vector<128x128xf32>
    %cst_11 = arith.constant dense<0xFF800000> : vector<128xf32>
    %14 = vector.multi_reduction <maximumf>, %13, %cst_11 [1] : vector<128x128xf32> to vector<128xf32>
    %15 = vector.shape_cast %14 : vector<128xf32> to vector<128x1xf32>
    %16 = vector.broadcast %15 : vector<128x1xf32> to vector<128x128xf32>
    %17 = arith.subf %13, %16 : vector<128x128xf32>
    %18 = math.exp %17 : vector<128x128xf32>
    %cst_12 = arith.constant dense<0.000000e+00> : vector<128xf32>
    %19 = vector.multi_reduction <add>, %18, %cst_12 [1] : vector<128x128xf32> to vector<128xf32>
    %20 = vector.shape_cast %19 : vector<128xf32> to vector<128x1xf32>
    %21 = tpu.reciprocal %20 {approx = true} : vector<128x1xf32> -> vector<128x1xf32>
    %22 = arith.mulf %20, %21 : vector<128x1xf32>
    %cst_13 = arith.constant 2.000000e+00 : f32
    %23 = vector.broadcast %cst_13 : f32 to vector<128x1xf32>
    %24 = arith.subf %23, %22 : vector<128x1xf32>
    %25 = arith.mulf %21, %24 : vector<128x1xf32>
    %26 = vector.broadcast %25 : vector<128x1xf32> to vector<128x128xf32>
    %27 = arith.mulf %18, %26 : vector<128x128xf32>
    %c0_14 = arith.constant 0 : index
    %c0_15 = arith.constant 0 : index
    %28 = vector.load %arg6[%c0_14, %c0_15] : memref<128x128xf32, #tpu.memory_space<vmem>>, vector<128x128xf32>
    tpu.vector_store %arg6[%c0_14, %c0_15], %27 {strides = array<i32>} : memref<128x128xf32, #tpu.memory_space<vmem>>, vector<128x128xf32>,
    return
  }
  func.func @transform_0(%arg0: i32) -> (i32, i32) {
    %c0_i32 = arith.constant 0 : i32
    %c0_i32_0 = arith.constant 0 : i32
    return %arg0, %c0_i32 : i32, i32
  }
  func.func @transform_1(%arg0: i32) -> (i32, i32) {
    %c0_i32 = arith.constant 0 : i32
    %c0_i32_0 = arith.constant 0 : i32
    %c0_i32_1 = arith.constant 0 : i32
    return %c0_i32, %c0_i32_0 : i32, i32
  }
  func.func @transform_2(%arg0: i32) -> (i32, i32) {
    %c0_i32 = arith.constant 0 : i32
    %c0_i32_0 = arith.constant 0 : i32
    %c0_i32_1 = arith.constant 0 : i32
    return %c0_i32, %c0_i32_0 : i32, i32
  }
  func.func @transform_3(%arg0: i32) -> (i32, i32) {
    %c0_i32 = arith.constant 0 : i32
    %c0_i32_0 = arith.constant 0 : i32
    %c0_i32_1 = arith.constant 0 : i32
    return %c0_i32, %c0_i32_0 : i32, i32
  }
  func.func @transform_4(%arg0: i32) -> (i32, i32) {
    %c0_i32 = arith.constant 0 : i32
    %c0_i32_0 = arith.constant 0 : i32
    %c0_i32_1 = arith.constant 0 : i32
    return %c0_i32, %c0_i32_0 : i32, i32
  }
  func.func @transform_5(%arg0: i32) -> (i32, i32) {
    %c0_i32 = arith.constant 0 : i32
    %c0_i32_0 = arith.constant 0 : i32
    return %arg0, %c0_i32 : i32, i32
  }
}

module attributes {stable_mosaic.version = 11 : i64} {
  func.func @kernel(%arg0: i32, %arg1: memref<128x128xbf16, #tpu.memory_space<vmem>>, %arg2: memref<128x128xbf16, #tpu.memory_space<vmem>>, %arg3: memref<1x128xf32, #tpu.memory_space<vmem>>, %arg4: memref<128x128xbf16, #tpu.memory_space<vmem>>, %arg5: memref<1x128xf32, #tpu.memory_space<vmem>>, %arg6: memref<128x128xf32, #tpu.memory_space<vmem>>) attributes {dimension_semantics = [#tpu.dimension_semantics<parallel>], iteration_bounds = array<i64: 2>, scalar_prefetch = 0 : i64, scratch_operands = 0 : i64, tpu.core_type = #tpu.core_type<tc>, window_params = [{transform_indices = @transform_0, window_bounds = array<i64: 128, 128>}, {pipeline_mode = #tpu.pipeline_mode<synchronous>, transform_indices = @transform_1, window_bounds = array<i64: 128, 128>}, {pipeline_mode = #tpu.pipeline_mode<synchronous>, transform_indices = @transform_2, window_bounds = array<i64: 1, 128>}, {pipeline_mode = #tpu.pipeline_mode<synchronous>, transform_indices = @transform_3, window_bounds = array<i64: 128, 128>}, {pipeline_mode = #tpu.pipeline_mode<synchronous>, transform_indices = @transform_4, window_bounds = array<i64: 1, 128>}, {transform_indices = @transform_5, window_bounds = array<i64: 128, 128>}]} {
    %c0 = arith.constant 0 : index
    %c0_0 = arith.constant 0 : index
    %0 = vector.load %arg1[%c0, %c0_0] : memref<128x128xbf16, #tpu.memory_space<vmem>>, vector<128x128xbf16>
    %c0_1 = arith.constant 0 : index
    %c0_2 = arith.constant 0 : index
    %1 = vector.load %arg2[%c0_1, %c0_2] : memref<128x128xbf16, #tpu.memory_space<vmem>>, vector<128x128xbf16>
    %c0_3 = arith.constant 0 : index
    %c0_4 = arith.constant 0 : index
    %2 = vector.load %arg3[%c0_3, %c0_4] : memref<1x128xf32, #tpu.memory_space<vmem>>, vector<1x128xf32>
    %cst = arith.constant dense<0.000000e+00> : vector<128x128xf32>
    %3 = tpu.matmul %0, %1, %cst {dimension_numbers = #tpu.dot_dimension_numbers<[1], [0], [0], [1], [0, 0, 1, 1], [], []>} : vector<128x128xbf16>, vector<128x128xbf16>, vector<128x128xf32> -> vector<128x128xf32>
    %4 = vector.broadcast %2 : vector<1x128xf32> to vector<128x128xf32>
    %5 = arith.addf %3, %4 : vector<128x128xf32>
    %cst_5 = arith.constant 0.000000e+00 : f32
    %6 = vector.broadcast %cst_5 : f32 to vector<128x128xf32>
    %7 = arith.maximumf %5, %6 : vector<128x128xf32>
    %8 = arith.truncf %7 : vector<128x128xf32> to vector<128x128xbf16>
    %c0_6 = arith.constant 0 : index
    %c0_7 = arith.constant 0 : index
    %9 = vector.load %arg4[%c0_6, %c0_7] : memref<128x128xbf16, #tpu.memory_space<vmem>>, vector<128x128xbf16>
    %c0_8 = arith.constant 0 : index
    %c0_9 = arith.constant 0 : index
    %10 = vector.load %arg5[%c0_8, %c0_9] : memref<1x128xf32, #tpu.memory_space<vmem>>, vector<1x128xf32>
    %cst_10 = arith.constant dense<0.000000e+00> : vector<128x128xf32>
    %11 = tpu.matmul %8, %9, %cst_10 {dimension_numbers = #tpu.dot_dimension_numbers<[1], [0], [0], [1], [0, 0, 1, 1], [], []>} : vector<128x128xbf16>, vector<128x128xbf16>, vector<128x128xf32> -> vector<128x128xf32>
    %12 = vector.broadcast %10 : vector<1x128xf32> to vector<128x128xf32>
    %13 = arith.addf %11, %12 : vector<128x128xf32>
    %cst_11 = arith.constant dense<0xFF800000> : vector<128xf32>
    %14 = vector.multi_reduction <maximumf>, %13, %cst_11 [1] : vector<128x128xf32> to vector<128xf32>
    %15 = vector.shape_cast %14 : vector<128xf32> to vector<128x1xf32>
    %16 = vector.broadcast %15 : vector<128x1xf32> to vector<128x128xf32>
    %17 = arith.subf %13, %16 : vector<128x128xf32>
    %18 = math.exp %17 : vector<128x128xf32>
    %cst_12 = arith.constant dense<0.000000e+00> : vector<128xf32>
    %19 = vector.multi_reduction <add>, %18, %cst_12 [1] : vector<128x128xf32> to vector<128xf32>
    %20 = vector.shape_cast %19 : vector<128xf32> to vector<128x1xf32>
    %21 = tpu.reciprocal %20 {approx = true} : vector<128x1xf32> -> vector<128x1xf32>
    %22 = arith.mulf %20, %21 : vector<128x1xf32>
    %cst_13 = arith.constant 2.000000e+00 : f32
    %23 = vector.broadcast %cst_13 : f32 to vector<128x1xf32>
    %24 = arith.subf %23, %22 : vector<128x1xf32>
    %25 = arith.mulf %21, %24 : vector<128x1xf32>
    %26 = vector.broadcast %25 : vector<128x1xf32> to vector<128x128xf32>
    %27 = arith.mulf %18, %26 : vector<128x128xf32>
    %c0_14 = arith.constant 0 : index
    %c0_15 = arith.constant 0 : index
    %28 = vector.load %arg6[%c0_14, %c0_15] : memref<128x128xf32, #tpu.memory_space<vmem>>, vector<128x128xf32>
    tpu.vector_store %arg6[%c0_14, %c0_15], %27 {strides = array<i32>} : memref<128x128xf32, #tpu.memory_space<vmem>>, vector<128x128xf32>,
    return
  }
  func.func @transform_0(%arg0: i32) -> (i32, i32) {
    %c0_i32 = arith.constant 0 : i32
    %c0_i32_0 = arith.constant 0 : i32
    return %arg0, %c0_i32 : i32, i32
  }
  func.func @transform_1(%arg0: i32) -> (i32, i32) {
    %c0_i32 = arith.constant 0 : i32
    %c0_i32_0 = arith.constant 0 : i32
    %c0_i32_1 = arith.constant 0 : i32
    return %c0_i32, %c0_i32_0 : i32, i32
  }
  func.func @transform_2(%arg0: i32) -> (i32, i32) {
    %c0_i32 = arith.constant 0 : i32
    %c0_i32_0 = arith.constant 0 : i32
    %c0_i32_1 = arith.constant 0 : i32
    return %c0_i32, %c0_i32_0 : i32, i32
  }
  func.func @transform_3(%arg0: i32) -> (i32, i32) {
    %c0_i32 = arith.constant 0 : i32
    %c0_i32_0 = arith.constant 0 : i32
    %c0_i32_1 = arith.constant 0 : i32
    return %c0_i32, %c0_i32_0 : i32, i32
  }
  func.func @transform_4(%arg0: i32) -> (i32, i32) {
    %c0_i32 = arith.constant 0 : i32
    %c0_i32_0 = arith.constant 0 : i32
    %c0_i32_1 = arith.constant 0 : i32
    return %c0_i32, %c0_i32_0 : i32, i32
  }
  func.func @transform_5(%arg0: i32) -> (i32, i32) {
    %c0_i32 = arith.constant 0 : i32
    %c0_i32_0 = arith.constant 0 : i32
    return %arg0, %c0_i32 : i32, i32
  }
}

</mosaic_0001>

<bundles_post_ra>
// kernel: fc_forward_fused.1
= control target key start
LH: loop header
LB: loop body
LE: loop exit
PB: predicated region body
PF: predicated region fallthrough
CT: control target
= control target key end

     0   :  { %s1073_s18 = smov 0   ;;  %s1270_s0 = inlined_call_operand.vmem [shape: bf16[256,128], index: 0, kind: input, shape index: {}]   ;;  %s1271_s1 = inlined_call_operand.vmem [shape: bf16[128,128], index: 1, kind: input, shape index: {}]   ;;  %s1272_s2 = inlined_call_operand.vmem [shape: f32[1,128], index: 2, kind: input, shape index: {}]   ;;  %s1273_s3 = inlined_call_operand.vmem [shape: bf16[128,128], index: 3, kind: input, shape index: {}]   ;;  %s1274_s4 = inlined_call_operand.vmem [shape: f32[1,128], index: 4, kind: input, shape index: {}]   ;;  %s1275_s5 = inlined_call_operand.vmem [shape: f32[256,128], index: 5, kind: output, shape index: {}]  }
   0x1 LB: > { %s814_s19 = sadd.s32 4294967295, %s1041_s18   ;;  %p818_p0 = scmp.ge.s32.totalorder %s1041_s18, 1  ;;  %s1041_s18 = sphi %s1073_s18, %s15_s18  }
   0x2   : > { %p188_p1 = scmp.lt.s32.totalorder %s1041_s18, 3 }
   0x4   : > { %p189_p2 = pnand %p818_p0, %p188_p1 }
   0x5   : > { %s819_s28 = sshll.u32 (!%p189_p2), %s814_s19, 4 }
   0x6   : > { %192 = sbr.rel (%p189_p2) target bundleno = 638 (0x27e), region = 40  ;;  %p217_p3 = scmp.lt.s32.totalorder (!%p189_p2), %s819_s28, 31 }
   0xb   : > { %v936_v0 = vld [vmem:[%s1271_s1 + $0x38] sm:$0xff]  ;;  %v935_v1 = vld [vmem:[%s1271_s1 + $0x30] sm:$0xff]  ;;  %v934_v2 = vld [vmem:[%s1271_s1 + $0x28] sm:$0xff]  ;;  %s1277_s28 = smov (!%p217_p3, %s819_s28), 31 }
   0xc   : > { %360 = vmatpush.bf16.msra.mxu0 %v936_v0  ;;  %945 = vmatpush.bf16.msra.mxu2 %v936_v0  ;;  %v933_v3 = vld [vmem:[%s1271_s1 + $0x20] sm:$0xff]  ;;  %v932_v4 = vld [vmem:[%s1271_s1 + $0x18] sm:$0xff]  ;;  %v931_v5 = vld [vmem:[%s1271_s1 + $0x10] sm:$0xff]  ;;  %s820_s10 = sshll.u32 %s1277_s28, 2  ;;  %s822_s13 = sshll.u32 %s1277_s28, 3 }
   0xd   : > { %v930_v6 = vld [vmem:[%s1271_s1 + $0x8] sm:$0xff]  ;;  %v929_v7 = vld [vmem:[%s1271_s1] sm:$0xff]  ;;  %s220_s15 = scalar_lea.vmem %s1270_s0, %s820_s10  ;;  %v944_v12 = vld [vmem:[%s1273_s3 + $0x38] sm:$0xff]  ;;  %s1233_s16 = scalar_lea.vmem %s1275_s5, %s822_s13 }
   0xe   : > { %v921_v8 = vld [vmem:[%s220_s15] sm:$0xff]  ;;  %v922_v10 = vld [vmem:[%s220_s15 + $0x8] sm:$0xff]  ;;  %501 = vmatpush.bf16.msra.mxu1 %v944_v12  ;;  %v943_v13 = vld [vmem:[%s1273_s3 + $0x30] sm:$0xff]  ;;  %953 = vmatpush.bf16.msra.mxu3 %v944_v12 }
   0xf   : > { %v925_v9 = vld [vmem:[%s220_s15 + $0x20] sm:$0xff]  ;;  %v926_v11 = vld [vmem:[%s220_s15 + $0x28] sm:$0xff]  ;;  %v923_v16 = vld [vmem:[%s220_s15 + $0x10] sm:$0xff] }
  0x10   : > { %361 = vmatpush.bf16.msra.mxu0 %v935_v1  ;;  %946 = vmatpush.bf16.msra.mxu2 %v935_v1  ;;  %v942_v14 = vld [vmem:[%s1273_s3 + $0x28] sm:$0xff]  ;;  %v941_v15 = vld [vmem:[%s1273_s3 + $0x20] sm:$0xff]  ;;  %v927_v17 = vld [vmem:[%s220_s15 + $0x30] sm:$0xff] }
  0x11   : > { %v924_v18 = vld [vmem:[%s220_s15 + $0x18] sm:$0xff]  ;;  %v939_v21 = vld [vmem:[%s1273_s3 + $0x10] sm:$0xff]  ;;  %v938_v22 = vld [vmem:[%s1273_s3 + $0x8] sm:$0xff] }
  0x12   : > { %502 = vmatpush.bf16.msra.mxu1 %v943_v13  ;;  %954 = vmatpush.bf16.msra.mxu3 %v943_v13  ;;  %v928_v19 = vld [vmem:[%s220_s15 + $0x38] sm:$0xff]  ;;  %v937_v23 = vld [vmem:[%s1273_s3] sm:$0xff] }
  0x13   : > { %v940_v20 = vld [vmem:[%s1273_s3 + $0x18] sm:$0xff]  ;;  %v969_v25 = vld [vmem:[%s1272_s2] ss:$0 sm:$0xff] }
  0x14   : > { %362 = vmatpush.bf16.msra.mxu0 %v934_v2  ;;  %947 = vmatpush.bf16.msra.mxu2 %v934_v2 }
  0x16   : > { %503 = vmatpush.bf16.msra.mxu1 %v942_v14  ;;  %955 = vmatpush.bf16.msra.mxu3 %v942_v14 }
  0x18   : > { %363 = vmatpush.bf16.msra.mxu0 %v933_v3  ;;  %948 = vmatpush.bf16.msra.mxu2 %v933_v3 }
  0x1a   : > { %504 = vmatpush.bf16.msra.mxu1 %v941_v15  ;;  %956 = vmatpush.bf16.msra.mxu3 %v941_v15 }
  0x1c   : > { %364 = vmatpush.bf16.msra.mxu0 %v932_v4  ;;  %949 = vmatpush.bf16.msra.mxu2 %v932_v4 }
  0x1e   : > { %505 = vmatpush.bf16.msra.mxu1 %v940_v20  ;;  %957 = vmatpush.bf16.msra.mxu3 %v940_v20 }
  0x20   : > { %365 = vmatpush.bf16.msra.mxu0 %v931_v5  ;;  %950 = vmatpush.bf16.msra.mxu2 %v931_v5 }
  0x22   : > { %506 = vmatpush.bf16.msra.mxu1 %v939_v21  ;;  %958 = vmatpush.bf16.msra.mxu3 %v939_v21 }
  0x24   : > { %366 = vmatpush.bf16.msra.mxu0 %v930_v6  ;;  %951 = vmatpush.bf16.msra.mxu2 %v930_v6 }
  0x26   : > { %507 = vmatpush.bf16.msra.mxu1 %v938_v22  ;;  %959 = vmatpush.bf16.msra.mxu3 %v938_v22 }
  0x28   : > { %367 = vmatpush.bf16.msra.mxu0 %v929_v7  ;;  %952 = vmatpush.bf16.msra.mxu2 %v929_v7 }
  0x2a   : > { %508 = vmatpush.bf16.msra.mxu1 %v937_v23  ;;  %960 = vmatpush.bf16.msra.mxu3 %v937_v23 }
  0x2b   : > { %368 = vmatmul.bf16.vlgmr.msra.gmra.mxu0 %v921_v8  ;;  %388 = vmatmul.bf16.vlgmr.msra.gmra.mxu2 %v925_v9 }
  0x3b   : > { %373 = vmatmul.bf16.gmra.mxu0 %v922_v10  ;;  %393 = vmatmul.bf16.gmra.mxu2 %v926_v11 }
  0x4b   : > { %378 = vmatmul.bf16.gmra.mxu0 %v923_v16  ;;  %398 = vmatmul.bf16.gmra.mxu2 %v927_v17  ;;  %v970_v17 = vld [vmem:[%s1274_s4] ss:$0 sm:$0xff] }
  0x5b   : > { %383 = vmatmul.bf16.gmra.mxu0 %v924_v18  ;;  %403 = vmatmul.bf16.gmra.mxu2 %v928_v19 }
  0xa8   : > { %v369_v24 = vpop.f32.mrf.mxu0 }
  0xa9   : > { %v370_v27 = vadd.f32 %v969_v25, %v369_v24 }
  0xab   : > { %v409_v30 = vmax.f32 %v370_v27, 0.0 }
  0xae   : > { %v389_v26 = vpop.f32.mrf.mxu2 }
  0xaf   : > { %v390_v32 = vadd.f32 %v969_v25, %v389_v26 }
  0xb0   : > { %v371_v28 = vpop.f32.mrf.mxu0 }
  0xb1   : > { %v372_v29 = vadd.f32 %v969_v25, %v371_v28  ;;  %v417_v37 = vmax.f32 %v390_v32, 0.0 }
  0xb3   : > { %v410_v31 = vmax.f32 %v372_v29, 0.0 }
  0xb5   : > { %v425_v33 = vpack.c.bf16 %v410_v31, %v409_v30 }
  0xb6   : > { %v391_v34 = vpop.f32.mrf.mxu2 }
  0xb7   : > { %v392_v35 = vadd.f32 %v969_v25, %v391_v34  ;;  %509 = vmatmul.bf16.vlgmr.msra.gmra.mxu1 %v425_v33 }
  0xb8   : > { %v374_v36 = vpop.f32.mrf.mxu0 }
  0xb9   : > { %v418_v38 = vmax.f32 %v392_v35, 0.0  ;;  %v375_v41 = vadd.f32 %v969_v25, %v374_v36 }
  0xbb   : > { %v429_v39 = vpack.c.bf16 %v418_v38, %v417_v37  ;;  %v411_v44 = vmax.f32 %v375_v41, 0.0 }
  0xbd   : > { %529 = vmatmul.bf16.vlgmr.msra.gmra.mxu3 %v429_v39 }
  0xbe   : > { %v394_v40 = vpop.f32.mrf.mxu2 }
  0xbf   : > { %v395_v46 = vadd.f32 %v969_v25, %v394_v40 }
  0xc0   : > { %v376_v42 = vpop.f32.mrf.mxu0 }
  0xc1   : > { %v377_v43 = vadd.f32 %v969_v25, %v376_v42  ;;  %v419_v51 = vmax.f32 %v395_v46, 0.0 }
  0xc3   : > { %v412_v45 = vmax.f32 %v377_v43, 0.0 }
  0xc5   : > { %v426_v47 = vpack.c.bf16 %v412_v45, %v411_v44 }
  0xc6   : > { %v396_v48 = vpop.f32.mrf.mxu2 }
  0xc7   : > { %v397_v49 = vadd.f32 %v969_v25, %v396_v48  ;;  %514 = vmatmul.bf16.gmra.mxu1 %v426_v47 }
  0xc8   : > { %v379_v50 = vpop.f32.mrf.mxu0 }
  0xc9   : > { %v420_v52 = vmax.f32 %v397_v49, 0.0  ;;  %v380_v55 = vadd.f32 %v969_v25, %v379_v50 }
  0xcb   : > { %v430_v53 = vpack.c.bf16 %v420_v52, %v419_v51  ;;  %v413_v58 = vmax.f32 %v380_v55, 0.0 }
  0xcd   : > { %534 = vmatmul.bf16.gmra.mxu3 %v430_v53 }
  0xce   : > { %v399_v54 = vpop.f32.mrf.mxu2 }
  0xcf   : > { %v400_v60 = vadd.f32 %v969_v25, %v399_v54 }
  0xd0   : > { %v381_v56 = vpop.f32.mrf.mxu0 }
  0xd1   : > { %v382_v57 = vadd.f32 %v969_v25, %v381_v56  ;;  %v421_v1 = vmax.f32 %v400_v60, 0.0 }
  0xd3   : > { %v414_v59 = vmax.f32 %v382_v57, 0.0 }
  0xd5   : > { %v427_v61 = vpack.c.bf16 %v414_v59, %v413_v58 }
  0xd6   : > { %v401_v62 = vpop.f32.mrf.mxu2 }
  0xd7   : > { %v402_v63 = vadd.f32 %v969_v25, %v401_v62  ;;  %519 = vmatmul.bf16.gmra.mxu1 %v427_v61 }
  0xd8   : > { %v384_v0 = vpop.f32.mrf.mxu0 }
  0xd9   : > { %v422_v2 = vmax.f32 %v402_v63, 0.0  ;;  %v385_v5 = vadd.f32 %v969_v25, %v384_v0 }
  0xdb   : > { %v431_v3 = vpack.c.bf16 %v422_v2, %v421_v1  ;;  %v415_v8 = vmax.f32 %v385_v5, 0.0 }
  0xdd   : > { %539 = vmatmul.bf16.gmra.mxu3 %v431_v3 }
  0xde   : > { %v404_v4 = vpop.f32.mrf.mxu2 }
  0xdf   : > { %v405_v10 = vadd.f32 %v969_v25, %v404_v4 }
  0xe0   : > { %v386_v6 = vpop.f32.mrf.mxu0 }
  0xe1   : > { %v387_v7 = vadd.f32 %v969_v25, %v386_v6  ;;  %v423_v14 = vmax.f32 %v405_v10, 0.0 }
  0xe3   : > { %v416_v9 = vmax.f32 %v387_v7, 0.0 }
  0xe5   : > { %v428_v11 = vpack.c.bf16 %v416_v9, %v415_v8 }
  0xe6   : > { %v406_v12 = vpop.f32.mrf.mxu2 }
  0xe7   : > { %v407_v13 = vadd.f32 %v969_v25, %v406_v12  ;;  %524 = vmatmul.bf16.gmra.mxu1 %v428_v11 }
  0xe9   : > { %v424_v15 = vmax.f32 %v407_v13, 0.0 }
  0xeb   : > { %v432_v16 = vpack.c.bf16 %v424_v15, %v423_v14 }
  0xed   : > { %544 = vmatmul.bf16.gmra.mxu3 %v432_v16 }
 0x134   : > { %v510_v18 = vpop.f32.mrf.mxu1 }
 0x135   : > { %v511_v19 = vadd.f32 %v970_v17, %v510_v18 }
 0x137   : > { %550 = vmax.xlane.f32.xlu0 %v511_v19 }
 0x13c   : > { %v512_v20 = vpop.f32.mrf.mxu1 }
 0x13d   : > { %v513_v21 = vadd.f32 %v970_v17, %v512_v20 }
 0x13f   : > { %552 = vmax.xlane.f32.xlu0 %v513_v21 }
 0x140   : > { %v530_v22 = vpop.f32.mrf.mxu3 }
 0x141   : > { %v531_v23 = vadd.f32 %v970_v17, %v530_v22 }
 0x143   : > { %566 = vmax.xlane.f32.xlu2 %v531_v23 }
 0x144   : > { %v515_v24 = vpop.f32.mrf.mxu1 }
 0x145   : > { %v516_v25 = vadd.f32 %v970_v17, %v515_v24 }
 0x147   : > { %554 = vmax.xlane.f32.xlu1 %v516_v25 }
 0x148   : > { %v532_v26 = vpop.f32.mrf.mxu3 }
 0x149   : > { %v533_v27 = vadd.f32 %v970_v17, %v532_v26 }
 0x14b   : > { %568 = vmax.xlane.f32.xlu0 %v533_v27 }
 0x14c   : > { %v517_v28 = vpop.f32.mrf.mxu1 }
 0x14d   : > { %v518_v29 = vadd.f32 %v970_v17, %v517_v28 }
 0x14f   : > { %556 = vmax.xlane.f32.xlu1 %v518_v29 }
 0x150   : > { %v535_v30 = vpop.f32.mrf.mxu3 }
 0x151   : > { %v1141_v32 = vadd.f32 %v970_v17, %v535_v30 }
 0x154   : > { %v520_v31 = vpop.f32.mrf.mxu1 }
 0x155   : > { %v1143_v33 = vadd.f32 %v970_v17, %v520_v31 }
 0x157   : > { %558 = vmax.xlane.f32.xlu2 %v1143_v33  ;;  %570 = vmax.xlane.f32.xlu1 %v1141_v32 }
 0x158   : > { %v537_v34 = vpop.f32.mrf.mxu3 }
 0x159   : > { %v1147_v36 = vadd.f32 %v970_v17, %v537_v34 }
 0x15c   : > { %v522_v35 = vpop.f32.mrf.mxu1 }
 0x15d   : > { %v1153_v40 = vadd.f32 %v970_v17, %v522_v35 }
 0x15f   : > { %572 = vmax.xlane.f32.xlu2 %v1147_v36 }
 0x160   : > { %v540_v37 = vpop.f32.mrf.mxu3 }
 0x161   : > { %v1150_v38 = vadd.f32 %v970_v17, %v540_v37 }
 0x163   : > { %574 = vmax.xlane.f32.xlu0 %v1150_v38 }
 0x164   : > { %v525_v39 = vpop.f32.mrf.mxu1 }
 0x165   : > { %v1156_v42 = vadd.f32 %v970_v17, %v525_v39 }
 0x167   : > { %560 = vmax.xlane.f32.xlu2 %v1153_v40 }
 0x168   : > { %v542_v41 = vpop.f32.mrf.mxu3 }
 0x169   : > { %v1165_v47 = vadd.f32 %v970_v17, %v542_v41 }
 0x16b   : > { %562 = vmax.xlane.f32.xlu0 %v1156_v42 }
 0x16c   : > { %v527_v43 = vpop.f32.mrf.mxu1 }
 0x16d   : > { %v1159_v44 = vadd.f32 %v970_v17, %v527_v43 }
 0x16f   : > { %564 = vmax.xlane.f32.xlu1 %v1159_v44 }
 0x170   : > { %v545_v45 = vpop.f32.mrf.mxu3 }
 0x171   : > { %v1162_v46 = vadd.f32 %v970_v17, %v545_v45 }
 0x173   : > { %578 = vmax.xlane.f32.xlu2 %v1162_v46 }
 0x177   : > { %576 = vmax.xlane.f32.xlu1 %v1165_v47 }
 0x178   : > { %v547_v48 = vpop.f32.mrf.mxu3 }
 0x179   : > { %v1168_v49 = vadd.f32 %v970_v17, %v547_v48 }
 0x17b   : > { %580 = vmax.xlane.f32.xlu0 %v1168_v49 }
 0x1aa   : > { %v551_v50 = vpop.xlane.xlu0 %550 }
 0x1ab   : > { %v582_v51 = vsub.f32 %v511_v19, %v551_v50 }
 0x1ad   : > { %v598_v52 = vmul.f32 1.442695, %v582_v51 }
 0x1af   : > { %971 = vpow2.f32 %v598_v52 }
 0x1b2   : > { %v553_v53 = vpop.xlane.xlu0 %552 }
 0x1b3   : > { %v583_v54 = vsub.f32 %v513_v21, %v553_v53 }
 0x1b5   : > { %v1171_v55 = vpop.eup %971  ;;  %v600_v56 = vmul.f32 1.442695, %v583_v54 }
 0x1b6   : > { %v567_v57 = vpop.xlane.xlu2 %566  ;;  %630 = vadd.xlane.f32.xlu1 %v1171_v55 }
 0x1b7   : > { %973 = vpow2.f32 %v600_v56  ;;  %v590_v58 = vsub.f32 %v531_v23, %v567_v57 }
 0x1b9   : > { %v614_v59 = vmul.f32 1.442695, %v590_v58 }
 0x1ba   : > { %v555_v60 = vpop.xlane.xlu1 %554 }
 0x1bb   : > { %975 = vpow2.f32 %v614_v59  ;;  %v584_v61 = vsub.f32 %v516_v25, %v555_v60 }
 0x1bd   : > { %v1174_v62 = vpop.eup %973  ;;  %v602_v63 = vmul.f32 1.442695, %v584_v61 }
 0x1be   : > { %632 = vadd.xlane.f32.xlu2 %v1174_v62  ;;  %v569_v0 = vpop.xlane.xlu0 %568 }
 0x1bf   : > { %v591_v1 = vsub.f32 %v533_v27, %v569_v0  ;;  %977 = vpow2.f32 %v602_v63 }
 0x1c1   : > { %v1177_v2 = vpop.eup %975  ;;  %v616_v3 = vmul.f32 1.442695, %v591_v1 }
 0x1c2   : > { %v557_v4 = vpop.xlane.xlu1 %556  ;;  %646 = vadd.xlane.f32.xlu0 %v1177_v2 }
 0x1c3   : > { %979 = vpow2.f32 %v616_v3  ;;  %v585_v5 = vsub.f32 %v518_v29, %v557_v4 }
 0x1c5   : > { %v604_v6 = vmul.f32 1.442695, %v585_v5  ;;  %v1180_v7 = vpop.eup %977 }
 0x1c7   : > { %981 = vpow2.f32 %v604_v6 }
 0x1c9   : > { %v1182_v8 = vpop.eup %979 }
 0x1ca   : > { %v559_v9 = vpop.xlane.xlu2 %558  ;;  %v571_v10 = vpop.xlane.xlu1 %570  ;;  %634 = vadd.xlane.f32.xlu0 %v1180_v7  ;;  %648 = vadd.xlane.f32.xlu1 %v1182_v8 }
 0x1cb   : > { %v592_v11 = vsub.f32 %v1141_v32, %v571_v10  ;;  %v586_v13 = vsub.f32 %v1143_v33, %v559_v9 }
 0x1cd   : > { %v618_v12 = vmul.f32 1.442695, %v592_v11  ;;  %v1188_v14 = vpop.eup %981  ;;  %v606_v17 = vmul.f32 1.442695, %v586_v13 }
 0x1cf   : > { %983 = vpow2.f32 %v618_v12 }
 0x1d2   : > { %v573_v15 = vpop.xlane.xlu2 %572  ;;  %636 = vadd.xlane.f32.xlu1 %v1188_v14 }
 0x1d3   : > { %v593_v16 = vsub.f32 %v1147_v36, %v573_v15 }
 0x1d5   : > { %v620_v18 = vmul.f32 1.442695, %v593_v16  ;;  %v1192_v19 = vpop.eup %983 }
 0x1d6   : > { %v575_v20 = vpop.xlane.xlu0 %574  ;;  %650 = vadd.xlane.f32.xlu2 %v1192_v19 }
 0x1d7   : > { %985 = vpow2.f32 %v620_v18  ;;  %v594_v21 = vsub.f32 %v1150_v38, %v575_v20 }
 0x1d8   : > { %987 = vpow2.f32 %v606_v17 }
 0x1d9   : > { %v622_v22 = vmul.f32 1.442695, %v594_v21 }
 0x1da   : > { %v561_v23 = vpop.xlane.xlu2 %560 }
 0x1db   : > { %989 = vpow2.f32 %v622_v22  ;;  %v587_v24 = vsub.f32 %v1153_v40, %v561_v23 }
 0x1dd   : > { %v1197_v25 = vpop.eup %985  ;;  %v608_v26 = vmul.f32 1.442695, %v587_v24 }
 0x1de   : > { %v1199_v27 = vpop.eup %987  ;;  %652 = vadd.xlane.f32.xlu0 %v1197_v25  ;;  %v563_v28 = vpop.xlane.xlu0 %562 }
 0x1df   : > { %991 = vpow2.f32 %v608_v26  ;;  %638 = vadd.xlane.f32.xlu2 %v1199_v27  ;;  %v588_v29 = vsub.f32 %v1156_v42, %v563_v28 }
 0x1e1   : > { %v1204_v30 = vpop.eup %989  ;;  %v610_v31 = vmul.f32 1.442695, %v588_v29 }
 0x1e2   : > { %v565_v32 = vpop.xlane.xlu1 %564  ;;  %654 = vadd.xlane.f32.xlu1 %v1204_v30 }
 0x1e3   : > { %993 = vpow2.f32 %v610_v31  ;;  %v589_v33 = vsub.f32 %v1159_v44, %v565_v32 }
 0x1e5   : > { %v1208_v34 = vpop.eup %991  ;;  %v612_v35 = vmul.f32 1.442695, %v589_v33 }
 0x1e6   : > { %v579_v36 = vpop.xlane.xlu2 %578  ;;  %640 = vadd.xlane.f32.xlu0 %v1208_v34 }
 0x1e7   : > { %995 = vpow2.f32 %v612_v35  ;;  %v596_v37 = vsub.f32 %v1162_v46, %v579_v36 }
 0x1e9   : > { %v1212_v38 = vpop.eup %993  ;;  %v626_v39 = vmul.f32 1.442695, %v596_v37 }
 0x1ea   : > { %v577_v40 = vpop.xlane.xlu1 %576  ;;  %642 = vadd.xlane.f32.xlu1 %v1212_v38 }
 0x1eb   : > { %997 = vpow2.f32 %v626_v39  ;;  %v595_v41 = vsub.f32 %v1165_v47, %v577_v40 }
 0x1ed   : > { %v1216_v42 = vpop.eup %995  ;;  %v624_v43 = vmul.f32 1.442695, %v595_v41 }
 0x1ee   : > { %644 = vadd.xlane.f32.xlu2 %v1216_v42  ;;  %v581_v44 = vpop.xlane.xlu0 %580 }
 0x1ef   : > { %999 = vpow2.f32 %v624_v43  ;;  %v597_v45 = vsub.f32 %v1168_v49, %v581_v44 }
 0x1f1   : > { %v1220_v46 = vpop.eup %997  ;;  %v628_v48 = vmul.f32 1.442695, %v597_v45 }
 0x1f2   : > { %658 = vadd.xlane.f32.xlu0 %v1220_v46 }
 0x1f3   : > { %1001 = vpow2.f32 %v628_v48 }
 0x1f5   : > { %v1223_v50 = vpop.eup %999 }
 0x1f6   : > { %656 = vadd.xlane.f32.xlu2 %v1223_v50 }
 0x1f9   : > { %v1226_v47 = vpop.eup %1001 }
 0x1fa   : > { %660 = vadd.xlane.f32.xlu1 %v1226_v47 }
 0x229   : > { %v631_v51 = vpop.xlane.xlu1 %630 }
 0x22a   : > { %1003 = vrcp.f32 %v631_v51 }
 0x230   : > { %v1004_v52 = vpop.eup %1003 }
 0x231   : > { %v678_v53 = vmul.f32 %v1004_v52, %v631_v51  ;;  %v633_v54 = vpop.xlane.xlu2 %632 }
 0x232   : > { %1005 = vrcp.f32 %v633_v54 }
 0x233   : > { %v694_v49 = vsub.f32 2.0, %v678_v53 }
 0x235   : > { %v710_v56 = vmul.f32 %v1004_v52, %v694_v49  ;;  %v647_v57 = vpop.xlane.xlu0 %646 }
 0x236   : > { %1007 = vrcp.f32 %v647_v57 }
 0x237   : > { %v726_v58 = vmul.f32 %v1171_v55, %v710_v56 }
 0x238   : > { %v1006_v59 = vpop.eup %1005 }
 0x239   : > { %742 = vst [vmem:[%s1233_s16] sm:$0xff] %v726_v58  ;;  %v679_v60 = vmul.f32 %v1006_v59, %v633_v54 }
 0x23b   : > { %v695_v61 = vsub.f32 2.0, %v679_v60 }
 0x23c   : > { %v1008_v63 = vpop.eup %1007 }
 0x23d   : > { %v711_v0 = vmul.f32 %v1006_v59, %v695_v61  ;;  %v686_v1 = vmul.f32 %v1008_v63, %v647_v57  ;;  %v649_v3 = vpop.xlane.xlu1 %648  ;;  %v635_v4 = vpop.xlane.xlu0 %634 }
 0x23e   : > { %1009 = vrcp.f32 %v649_v3 }
 0x23f   : > { %v727_v5 = vmul.f32 %v1174_v62, %v711_v0  ;;  %v702_v6 = vsub.f32 2.0, %v686_v1  ;;  %1011 = vrcp.f32 %v635_v4 }
 0x241   : > { %743 = vst [vmem:[%s1233_s16 + $0x8] sm:$0xff] %v727_v5  ;;  %v718_v9 = vmul.f32 %v1008_v63, %v702_v6 }
 0x243   : > { %v734_v10 = vmul.f32 %v1177_v2, %v718_v9 }
 0x244   : > { %v1010_v55 = vpop.eup %1009 }
 0x245   : > { %v1012_v11 = vpop.eup %1011  ;;  %750 = vst [vmem:[%s1233_s16 + $0x40] sm:$0xff] %v734_v10  ;;  %v687_v12 = vmul.f32 %v1010_v55, %v649_v3  ;;  %v637_v13 = vpop.xlane.xlu1 %636 }
 0x246   : > { %v680_v15 = vmul.f32 %v1012_v11, %v635_v4  ;;  %1013 = vrcp.f32 %v637_v13 }
 0x247   : > { %v703_v16 = vsub.f32 2.0, %v687_v12 }
 0x248   : > { %v696_v17 = vsub.f32 2.0, %v680_v15 }
 0x249   : > { %v719_v18 = vmul.f32 %v1010_v55, %v703_v16  ;;  %v651_v62 = vpop.xlane.xlu2 %650 }
 0x24a   : > { %v712_v20 = vmul.f32 %v1012_v11, %v696_v17  ;;  %1015 = vrcp.f32 %v651_v62 }
 0x24b   : > { %v735_v21 = vmul.f32 %v1182_v8, %v719_v18 }
 0x24c   : > { %v1014_v22 = vpop.eup %1013  ;;  %v728_v2 = vmul.f32 %v1180_v7, %v712_v20 }
 0x24d   : > { %751 = vst [vmem:[%s1233_s16 + $0x48] sm:$0xff] %v735_v21  ;;  %v681_v23 = vmul.f32 %v1014_v22, %v637_v13 }
 0x24e   : > { %744 = vst [vmem:[%s1233_s16 + $0x10] sm:$0xff] %v728_v2 }
 0x24f   : > { %v697_v24 = vsub.f32 2.0, %v681_v23 }
 0x250   : > { %v1016_v26 = vpop.eup %1015 }
 0x251   : > { %v713_v28 = vmul.f32 %v1014_v22, %v697_v24  ;;  %v653_v29 = vpop.xlane.xlu0 %652  ;;  %v688_v31 = vmul.f32 %v1016_v26, %v651_v62 }
 0x252   : > { %v639_v32 = vpop.xlane.xlu2 %638  ;;  %1017 = vrcp.f32 %v653_v29 }
 0x253   : > { %v729_v33 = vmul.f32 %v1188_v14, %v713_v28  ;;  %1019 = vrcp.f32 %v639_v32  ;;  %v704_v8 = vsub.f32 2.0, %v688_v31 }
 0x255   : > { %745 = vst [vmem:[%s1233_s16 + $0x18] sm:$0xff] %v729_v33  ;;  %v655_v35 = vpop.xlane.xlu1 %654  ;;  %v720_v36 = vmul.f32 %v1016_v26, %v704_v8 }
 0x256   : > { %1021 = vrcp.f32 %v655_v35 }
 0x257   : > { %v736_v37 = vmul.f32 %v1192_v19, %v720_v36 }
 0x258   : > { %v1018_v7 = vpop.eup %1017 }
 0x259   : > { %v1020_v39 = vpop.eup %1019  ;;  %v689_v40 = vmul.f32 %v1018_v7, %v653_v29  ;;  %v641_v41 = vpop.xlane.xlu0 %640  ;;  %752 = vst [vmem:[%s1233_s16 + $0x50] sm:$0xff] %v736_v37 }
 0x25a   : > { %v682_v43 = vmul.f32 %v1020_v39, %v639_v32  ;;  %1023 = vrcp.f32 %v641_v41 }
 0x25b   : > { %v705_v44 = vsub.f32 2.0, %v689_v40 }
 0x25c   : > { %v1022_v45 = vpop.eup %1021  ;;  %v698_v14 = vsub.f32 2.0, %v682_v43 }
 0x25d   : > { %v721_v48 = vmul.f32 %v1018_v7, %v705_v44  ;;  %v690_v51 = vmul.f32 %v1022_v45, %v655_v35  ;;  %v643_v52 = vpop.xlane.xlu1 %642 }
 0x25e   : > { %v714_v53 = vmul.f32 %v1020_v39, %v698_v14  ;;  %1025 = vrcp.f32 %v643_v52 }
 0x25f   : > { %v737_v54 = vmul.f32 %v1197_v25, %v721_v48  ;;  %v706_v19 = vsub.f32 2.0, %v690_v51 }
 0x260   : > { %v1024_v49 = vpop.eup %1023  ;;  %v730_v56 = vmul.f32 %v1199_v27, %v714_v53 }
 0x261   : > { %753 = vst [vmem:[%s1233_s16 + $0x58] sm:$0xff] %v737_v54  ;;  %v722_v57 = vmul.f32 %v1022_v45, %v706_v19  ;;  %v683_v58 = vmul.f32 %v1024_v49, %v641_v41  ;;  %v645_v59 = vpop.xlane.xlu2 %644 }
 0x262   : > { %746 = vst [vmem:[%s1233_s16 + $0x20] sm:$0xff] %v730_v56  ;;  %1027 = vrcp.f32 %v645_v59 }
 0x263   : > { %v738_v60 = vmul.f32 %v1204_v30, %v722_v57  ;;  %v699_v61 = vsub.f32 2.0, %v683_v58 }
 0x264   : > { %v1026_v63 = vpop.eup %1025 }
 0x265   : > { %754 = vst [vmem:[%s1233_s16 + $0x60] sm:$0xff] %v738_v60  ;;  %v715_v0 = vmul.f32 %v1024_v49, %v699_v61  ;;  %v684_v1 = vmul.f32 %v1026_v63, %v643_v52  ;;  %v659_v25 = vpop.xlane.xlu0 %658 }
 0x266   : > { %1029 = vrcp.f32 %v659_v25 }
 0x267   : > { %v731_v3 = vmul.f32 %v1208_v34, %v715_v0  ;;  %v700_v27 = vsub.f32 2.0, %v684_v1 }
 0x268   : > { %v1028_v4 = vpop.eup %1027 }
 0x269   : > { %747 = vst [vmem:[%s1233_s16 + $0x28] sm:$0xff] %v731_v3  ;;  %v716_v5 = vmul.f32 %v1026_v63, %v700_v27  ;;  %v685_v6 = vmul.f32 %v1028_v4, %v645_v59  ;;  %v657_v9 = vpop.xlane.xlu2 %656 }
 0x26a   : > { %1031 = vrcp.f32 %v657_v9 }
 0x26b   : > { %v732_v30 = vmul.f32 %v1212_v38, %v716_v5  ;;  %v701_v10 = vsub.f32 2.0, %v685_v6 }
 0x26c   : > { %v1030_v55 = vpop.eup %1029 }
 0x26d   : > { %748 = vst [vmem:[%s1233_s16 + $0x30] sm:$0xff] %v732_v30  ;;  %v717_v11 = vmul.f32 %v1028_v4, %v701_v10  ;;  %v692_v12 = vmul.f32 %v1030_v55, %v659_v25  ;;  %v661_v13 = vpop.xlane.xlu1 %660 }
 0x26e   : > { %1033 = vrcp.f32 %v661_v13 }
 0x26f   : > { %v733_v34 = vmul.f32 %v1216_v42, %v717_v11  ;;  %v708_v15 = vsub.f32 2.0, %v692_v12 }
 0x270   : > { %v1032_v16 = vpop.eup %1031 }
 0x271   : > { %749 = vst [vmem:[%s1233_s16 + $0x38] sm:$0xff] %v733_v34  ;;  %v724_v17 = vmul.f32 %v1030_v55, %v708_v15  ;;  %v691_v18 = vmul.f32 %v1032_v16, %v657_v9 }
 0x273   : > { %v740_v20 = vmul.f32 %v1220_v46, %v724_v17  ;;  %v707_v38 = vsub.f32 2.0, %v691_v18 }
 0x274   : > { %v1034_v62 = vpop.eup %1033 }
 0x275   : > { %756 = vst [vmem:[%s1233_s16 + $0x70] sm:$0xff] %v740_v20  ;;  %v723_v21 = vmul.f32 %v1032_v16, %v707_v38  ;;  %v693_v22 = vmul.f32 %v1034_v62, %v661_v13 }
 0x277   : > { %v739_v2 = vmul.f32 %v1223_v50, %v723_v21  ;;  %v709_v23 = vsub.f32 2.0, %v693_v22 }
 0x279   : > { %755 = vst [vmem:[%s1233_s16 + $0x68] sm:$0xff] %v739_v2  ;;  %v725_v24 = vmul.f32 %v1034_v62, %v709_v23 }
 0x27b   : > { %v741_v42 = vmul.f32 %v1226_v47, %v725_v24 }
 0x27d   : > { %757 = vst [vmem:[%s1233_s16 + $0x78] sm:$0xff] %v741_v42 }
 0x27e PF: > { %s15_s18 = sadd.s32 1, %s1041_s18  }
 0x27f   : > { %p12_p4 = scmp.ge.s32.totalorder %s15_s18, 4  }
 0x281   :  { %14 = sbr.rel (!%p12_p4) target bundleno = 1 (0x1), region = 70 }

// kernel: fc_forward_fused.1
= control target key start
LH: loop header
LB: loop body
LE: loop exit
PB: predicated region body
PF: predicated region fallthrough
CT: control target
= control target key end

     0   :  { %s1073_s18 = smov 0   ;;  %s1270_s0 = inlined_call_operand.vmem [shape: bf16[256,128], index: 0, kind: input, shape index: {}]   ;;  %s1271_s1 = inlined_call_operand.vmem [shape: bf16[128,128], index: 1, kind: input, shape index: {}]   ;;  %s1272_s2 = inlined_call_operand.vmem [shape: f32[1,128], index: 2, kind: input, shape index: {}]   ;;  %s1273_s3 = inlined_call_operand.vmem [shape: bf16[128,128], index: 3, kind: input, shape index: {}]   ;;  %s1274_s4 = inlined_call_operand.vmem [shape: f32[1,128], index: 4, kind: input, shape index: {}]   ;;  %s1275_s5 = inlined_call_operand.vmem [shape: f32[256,128], index: 5, kind: output, shape index: {}]  }
   0x1 LB: > { %s814_s19 = sadd.s32 4294967295, %s1041_s18   ;;  %p818_p0 = scmp.ge.s32.totalorder %s1041_s18, 1  ;;  %s1041_s18 = sphi %s1073_s18, %s15_s18  }
   0x2   : > { %p188_p1 = scmp.lt.s32.totalorder %s1041_s18, 3 }
   0x4   : > { %p189_p2 = pnand %p818_p0, %p188_p1 }
   0x5   : > { %s819_s28 = sshll.u32 (!%p189_p2), %s814_s19, 4 }
   0x6   : > { %192 = sbr.rel (%p189_p2) target bundleno = 638 (0x27e), region = 40  ;;  %p217_p3 = scmp.lt.s32.totalorder (!%p189_p2), %s819_s28, 31 }
   0xb   : > { %v936_v0 = vld [vmem:[%s1271_s1 + $0x38] sm:$0xff]  ;;  %v935_v1 = vld [vmem:[%s1271_s1 + $0x30] sm:$0xff]  ;;  %v934_v2 = vld [vmem:[%s1271_s1 + $0x28] sm:$0xff]  ;;  %s1277_s28 = smov (!%p217_p3, %s819_s28), 31 }
   0xc   : > { %360 = vmatpush.bf16.msra.mxu0 %v936_v0  ;;  %945 = vmatpush.bf16.msra.mxu2 %v936_v0  ;;  %v933_v3 = vld [vmem:[%s1271_s1 + $0x20] sm:$0xff]  ;;  %v932_v4 = vld [vmem:[%s1271_s1 + $0x18] sm:$0xff]  ;;  %v931_v5 = vld [vmem:[%s1271_s1 + $0x10] sm:$0xff]  ;;  %s820_s10 = sshll.u32 %s1277_s28, 2  ;;  %s822_s13 = sshll.u32 %s1277_s28, 3 }
   0xd   : > { %v930_v6 = vld [vmem:[%s1271_s1 + $0x8] sm:$0xff]  ;;  %v929_v7 = vld [vmem:[%s1271_s1] sm:$0xff]  ;;  %s220_s15 = scalar_lea.vmem %s1270_s0, %s820_s10  ;;  %v944_v12 = vld [vmem:[%s1273_s3 + $0x38] sm:$0xff]  ;;  %s1233_s16 = scalar_lea.vmem %s1275_s5, %s822_s13 }
   0xe   : > { %v921_v8 = vld [vmem:[%s220_s15] sm:$0xff]  ;;  %v922_v10 = vld [vmem:[%s220_s15 + $0x8] sm:$0xff]  ;;  %501 = vmatpush.bf16.msra.mxu1 %v944_v12  ;;  %v943_v13 = vld [vmem:[%s1273_s3 + $0x30] sm:$0xff]  ;;  %953 = vmatpush.bf16.msra.mxu3 %v944_v12 }
   0xf   : > { %v925_v9 = vld [vmem:[%s220_s15 + $0x20] sm:$0xff]  ;;  %v926_v11 = vld [vmem:[%s220_s15 + $0x28] sm:$0xff]  ;;  %v923_v16 = vld [vmem:[%s220_s15 + $0x10] sm:$0xff] }
  0x10   : > { %361 = vmatpush.bf16.msra.mxu0 %v935_v1  ;;  %946 = vmatpush.bf16.msra.mxu2 %v935_v1  ;;  %v942_v14 = vld [vmem:[%s1273_s3 + $0x28] sm:$0xff]  ;;  %v941_v15 = vld [vmem:[%s1273_s3 + $0x20] sm:$0xff]  ;;  %v927_v17 = vld [vmem:[%s220_s15 + $0x30] sm:$0xff] }
  0x11   : > { %v924_v18 = vld [vmem:[%s220_s15 + $0x18] sm:$0xff]  ;;  %v939_v21 = vld [vmem:[%s1273_s3 + $0x10] sm:$0xff]  ;;  %v938_v22 = vld [vmem:[%s1273_s3 + $0x8] sm:$0xff] }
  0x12   : > { %502 = vmatpush.bf16.msra.mxu1 %v943_v13  ;;  %954 = vmatpush.bf16.msra.mxu3 %v943_v13  ;;  %v928_v19 = vld [vmem:[%s220_s15 + $0x38] sm:$0xff]  ;;  %v937_v23 = vld [vmem:[%s1273_s3] sm:$0xff] }
  0x13   : > { %v940_v20 = vld [vmem:[%s1273_s3 + $0x18] sm:$0xff]  ;;  %v969_v25 = vld [vmem:[%s1272_s2] ss:$0 sm:$0xff] }
  0x14   : > { %362 = vmatpush.bf16.msra.mxu0 %v934_v2  ;;  %947 = vmatpush.bf16.msra.mxu2 %v934_v2 }
  0x16   : > { %503 = vmatpush.bf16.msra.mxu1 %v942_v14  ;;  %955 = vmatpush.bf16.msra.mxu3 %v942_v14 }
  0x18   : > { %363 = vmatpush.bf16.msra.mxu0 %v933_v3  ;;  %948 = vmatpush.bf16.msra.mxu2 %v933_v3 }
  0x1a   : > { %504 = vmatpush.bf16.msra.mxu1 %v941_v15  ;;  %956 = vmatpush.bf16.msra.mxu3 %v941_v15 }
  0x1c   : > { %364 = vmatpush.bf16.msra.mxu0 %v932_v4  ;;  %949 = vmatpush.bf16.msra.mxu2 %v932_v4 }
  0x1e   : > { %505 = vmatpush.bf16.msra.mxu1 %v940_v20  ;;  %957 = vmatpush.bf16.msra.mxu3 %v940_v20 }
  0x20   : > { %365 = vmatpush.bf16.msra.mxu0 %v931_v5  ;;  %950 = vmatpush.bf16.msra.mxu2 %v931_v5 }
  0x22   : > { %506 = vmatpush.bf16.msra.mxu1 %v939_v21  ;;  %958 = vmatpush.bf16.msra.mxu3 %v939_v21 }
  0x24   : > { %366 = vmatpush.bf16.msra.mxu0 %v930_v6  ;;  %951 = vmatpush.bf16.msra.mxu2 %v930_v6 }
  0x26   : > { %507 = vmatpush.bf16.msra.mxu1 %v938_v22  ;;  %959 = vmatpush.bf16.msra.mxu3 %v938_v22 }
  0x28   : > { %367 = vmatpush.bf16.msra.mxu0 %v929_v7  ;;  %952 = vmatpush.bf16.msra.mxu2 %v929_v7 }
  0x2a   : > { %508 = vmatpush.bf16.msra.mxu1 %v937_v23  ;;  %960 = vmatpush.bf16.msra.mxu3 %v937_v23 }
  0x2b   : > { %368 = vmatmul.bf16.vlgmr.msra.gmra.mxu0 %v921_v8  ;;  %388 = vmatmul.bf16.vlgmr.msra.gmra.mxu2 %v925_v9 }
  0x3b   : > { %373 = vmatmul.bf16.gmra.mxu0 %v922_v10  ;;  %393 = vmatmul.bf16.gmra.mxu2 %v926_v11 }
  0x4b   : > { %378 = vmatmul.bf16.gmra.mxu0 %v923_v16  ;;  %398 = vmatmul.bf16.gmra.mxu2 %v927_v17  ;;  %v970_v17 = vld [vmem:[%s1274_s4] ss:$0 sm:$0xff] }
  0x5b   : > { %383 = vmatmul.bf16.gmra.mxu0 %v924_v18  ;;  %403 = vmatmul.bf16.gmra.mxu2 %v928_v19 }
  0xa8   : > { %v369_v24 = vpop.f32.mrf.mxu0 }
  0xa9   : > { %v370_v27 = vadd.f32 %v969_v25, %v369_v24 }
  0xab   : > { %v409_v30 = vmax.f32 %v370_v27, 0.0 }
  0xae   : > { %v389_v26 = vpop.f32.mrf.mxu2 }
  0xaf   : > { %v390_v32 = vadd.f32 %v969_v25, %v389_v26 }
  0xb0   : > { %v371_v28 = vpop.f32.mrf.mxu0 }
  0xb1   : > { %v372_v29 = vadd.f32 %v969_v25, %v371_v28  ;;  %v417_v37 = vmax.f32 %v390_v32, 0.0 }
  0xb3   : > { %v410_v31 = vmax.f32 %v372_v29, 0.0 }
  0xb5   : > { %v425_v33 = vpack.c.bf16 %v410_v31, %v409_v30 }
  0xb6   : > { %v391_v34 = vpop.f32.mrf.mxu2 }
  0xb7   : > { %v392_v35 = vadd.f32 %v969_v25, %v391_v34  ;;  %509 = vmatmul.bf16.vlgmr.msra.gmra.mxu1 %v425_v33 }
  0xb8   : > { %v374_v36 = vpop.f32.mrf.mxu0 }
  0xb9   : > { %v418_v38 = vmax.f32 %v392_v35, 0.0  ;;  %v375_v41 = vadd.f32 %v969_v25, %v374_v36 }
  0xbb   : > { %v429_v39 = vpack.c.bf16 %v418_v38, %v417_v37  ;;  %v411_v44 = vmax.f32 %v375_v41, 0.0 }
  0xbd   : > { %529 = vmatmul.bf16.vlgmr.msra.gmra.mxu3 %v429_v39 }
  0xbe   : > { %v394_v40 = vpop.f32.mrf.mxu2 }
  0xbf   : > { %v395_v46 = vadd.f32 %v969_v25, %v394_v40 }
  0xc0   : > { %v376_v42 = vpop.f32.mrf.mxu0 }
  0xc1   : > { %v377_v43 = vadd.f32 %v969_v25, %v376_v42  ;;  %v419_v51 = vmax.f32 %v395_v46, 0.0 }
  0xc3   : > { %v412_v45 = vmax.f32 %v377_v43, 0.0 }
  0xc5   : > { %v426_v47 = vpack.c.bf16 %v412_v45, %v411_v44 }
  0xc6   : > { %v396_v48 = vpop.f32.mrf.mxu2 }
  0xc7   : > { %v397_v49 = vadd.f32 %v969_v25, %v396_v48  ;;  %514 = vmatmul.bf16.gmra.mxu1 %v426_v47 }
  0xc8   : > { %v379_v50 = vpop.f32.mrf.mxu0 }
  0xc9   : > { %v420_v52 = vmax.f32 %v397_v49, 0.0  ;;  %v380_v55 = vadd.f32 %v969_v25, %v379_v50 }
  0xcb   : > { %v430_v53 = vpack.c.bf16 %v420_v52, %v419_v51  ;;  %v413_v58 = vmax.f32 %v380_v55, 0.0 }
  0xcd   : > { %534 = vmatmul.bf16.gmra.mxu3 %v430_v53 }
  0xce   : > { %v399_v54 = vpop.f32.mrf.mxu2 }
  0xcf   : > { %v400_v60 = vadd.f32 %v969_v25, %v399_v54 }
  0xd0   : > { %v381_v56 = vpop.f32.mrf.mxu0 }
  0xd1   : > { %v382_v57 = vadd.f32 %v969_v25, %v381_v56  ;;  %v421_v1 = vmax.f32 %v400_v60, 0.0 }
  0xd3   : > { %v414_v59 = vmax.f32 %v382_v57, 0.0 }
  0xd5   : > { %v427_v61 = vpack.c.bf16 %v414_v59, %v413_v58 }
  0xd6   : > { %v401_v62 = vpop.f32.mrf.mxu2 }
  0xd7   : > { %v402_v63 = vadd.f32 %v969_v25, %v401_v62  ;;  %519 = vmatmul.bf16.gmra.mxu1 %v427_v61 }
  0xd8   : > { %v384_v0 = vpop.f32.mrf.mxu0 }
  0xd9   : > { %v422_v2 = vmax.f32 %v402_v63, 0.0  ;;  %v385_v5 = vadd.f32 %v969_v25, %v384_v0 }
  0xdb   : > { %v431_v3 = vpack.c.bf16 %v422_v2, %v421_v1  ;;  %v415_v8 = vmax.f32 %v385_v5, 0.0 }
  0xdd   : > { %539 = vmatmul.bf16.gmra.mxu3 %v431_v3 }
  0xde   : > { %v404_v4 = vpop.f32.mrf.mxu2 }
  0xdf   : > { %v405_v10 = vadd.f32 %v969_v25, %v404_v4 }
  0xe0   : > { %v386_v6 = vpop.f32.mrf.mxu0 }
  0xe1   : > { %v387_v7 = vadd.f32 %v969_v25, %v386_v6  ;;  %v423_v14 = vmax.f32 %v405_v10, 0.0 }
  0xe3   : > { %v416_v9 = vmax.f32 %v387_v7, 0.0 }
  0xe5   : > { %v428_v11 = vpack.c.bf16 %v416_v9, %v415_v8 }
  0xe6   : > { %v406_v12 = vpop.f32.mrf.mxu2 }
  0xe7   : > { %v407_v13 = vadd.f32 %v969_v25, %v406_v12  ;;  %524 = vmatmul.bf16.gmra.mxu1 %v428_v11 }
  0xe9   : > { %v424_v15 = vmax.f32 %v407_v13, 0.0 }
  0xeb   : > { %v432_v16 = vpack.c.bf16 %v424_v15, %v423_v14 }
  0xed   : > { %544 = vmatmul.bf16.gmra.mxu3 %v432_v16 }
 0x134   : > { %v510_v18 = vpop.f32.mrf.mxu1 }
 0x135   : > { %v511_v19 = vadd.f32 %v970_v17, %v510_v18 }
 0x137   : > { %550 = vmax.xlane.f32.xlu0 %v511_v19 }
 0x13c   : > { %v512_v20 = vpop.f32.mrf.mxu1 }
 0x13d   : > { %v513_v21 = vadd.f32 %v970_v17, %v512_v20 }
 0x13f   : > { %552 = vmax.xlane.f32.xlu0 %v513_v21 }
 0x140   : > { %v530_v22 = vpop.f32.mrf.mxu3 }
 0x141   : > { %v531_v23 = vadd.f32 %v970_v17, %v530_v22 }
 0x143   : > { %566 = vmax.xlane.f32.xlu2 %v531_v23 }
 0x144   : > { %v515_v24 = vpop.f32.mrf.mxu1 }
 0x145   : > { %v516_v25 = vadd.f32 %v970_v17, %v515_v24 }
 0x147   : > { %554 = vmax.xlane.f32.xlu1 %v516_v25 }
 0x148   : > { %v532_v26 = vpop.f32.mrf.mxu3 }
 0x149   : > { %v533_v27 = vadd.f32 %v970_v17, %v532_v26 }
 0x14b   : > { %568 = vmax.xlane.f32.xlu0 %v533_v27 }
 0x14c   : > { %v517_v28 = vpop.f32.mrf.mxu1 }
 0x14d   : > { %v518_v29 = vadd.f32 %v970_v17, %v517_v28 }
 0x14f   : > { %556 = vmax.xlane.f32.xlu1 %v518_v29 }
 0x150   : > { %v535_v30 = vpop.f32.mrf.mxu3 }
 0x151   : > { %v1141_v32 = vadd.f32 %v970_v17, %v535_v30 }
 0x154   : > { %v520_v31 = vpop.f32.mrf.mxu1 }
 0x155   : > { %v1143_v33 = vadd.f32 %v970_v17, %v520_v31 }
 0x157   : > { %558 = vmax.xlane.f32.xlu2 %v1143_v33  ;;  %570 = vmax.xlane.f32.xlu1 %v1141_v32 }
 0x158   : > { %v537_v34 = vpop.f32.mrf.mxu3 }
 0x159   : > { %v1147_v36 = vadd.f32 %v970_v17, %v537_v34 }
 0x15c   : > { %v522_v35 = vpop.f32.mrf.mxu1 }
 0x15d   : > { %v1153_v40 = vadd.f32 %v970_v17, %v522_v35 }
 0x15f   : > { %572 = vmax.xlane.f32.xlu2 %v1147_v36 }
 0x160   : > { %v540_v37 = vpop.f32.mrf.mxu3 }
 0x161   : > { %v1150_v38 = vadd.f32 %v970_v17, %v540_v37 }
 0x163   : > { %574 = vmax.xlane.f32.xlu0 %v1150_v38 }
 0x164   : > { %v525_v39 = vpop.f32.mrf.mxu1 }
 0x165   : > { %v1156_v42 = vadd.f32 %v970_v17, %v525_v39 }
 0x167   : > { %560 = vmax.xlane.f32.xlu2 %v1153_v40 }
 0x168   : > { %v542_v41 = vpop.f32.mrf.mxu3 }
 0x169   : > { %v1165_v47 = vadd.f32 %v970_v17, %v542_v41 }
 0x16b   : > { %562 = vmax.xlane.f32.xlu0 %v1156_v42 }
 0x16c   : > { %v527_v43 = vpop.f32.mrf.mxu1 }
 0x16d   : > { %v1159_v44 = vadd.f32 %v970_v17, %v527_v43 }
 0x16f   : > { %564 = vmax.xlane.f32.xlu1 %v1159_v44 }
 0x170   : > { %v545_v45 = vpop.f32.mrf.mxu3 }
 0x171   : > { %v1162_v46 = vadd.f32 %v970_v17, %v545_v45 }
 0x173   : > { %578 = vmax.xlane.f32.xlu2 %v1162_v46 }
 0x177   : > { %576 = vmax.xlane.f32.xlu1 %v1165_v47 }
 0x178   : > { %v547_v48 = vpop.f32.mrf.mxu3 }
 0x179   : > { %v1168_v49 = vadd.f32 %v970_v17, %v547_v48 }
 0x17b   : > { %580 = vmax.xlane.f32.xlu0 %v1168_v49 }
 0x1aa   : > { %v551_v50 = vpop.xlane.xlu0 %550 }
 0x1ab   : > { %v582_v51 = vsub.f32 %v511_v19, %v551_v50 }
 0x1ad   : > { %v598_v52 = vmul.f32 1.442695, %v582_v51 }
 0x1af   : > { %971 = vpow2.f32 %v598_v52 }
 0x1b2   : > { %v553_v53 = vpop.xlane.xlu0 %552 }
 0x1b3   : > { %v583_v54 = vsub.f32 %v513_v21, %v553_v53 }
 0x1b5   : > { %v1171_v55 = vpop.eup %971  ;;  %v600_v56 = vmul.f32 1.442695, %v583_v54 }
 0x1b6   : > { %v567_v57 = vpop.xlane.xlu2 %566  ;;  %630 = vadd.xlane.f32.xlu1 %v1171_v55 }
 0x1b7   : > { %973 = vpow2.f32 %v600_v56  ;;  %v590_v58 = vsub.f32 %v531_v23, %v567_v57 }
 0x1b9   : > { %v614_v59 = vmul.f32 1.442695, %v590_v58 }
 0x1ba   : > { %v555_v60 = vpop.xlane.xlu1 %554 }
 0x1bb   : > { %975 = vpow2.f32 %v614_v59  ;;  %v584_v61 = vsub.f32 %v516_v25, %v555_v60 }
 0x1bd   : > { %v1174_v62 = vpop.eup %973  ;;  %v602_v63 = vmul.f32 1.442695, %v584_v61 }
 0x1be   : > { %632 = vadd.xlane.f32.xlu2 %v1174_v62  ;;  %v569_v0 = vpop.xlane.xlu0 %568 }
 0x1bf   : > { %v591_v1 = vsub.f32 %v533_v27, %v569_v0  ;;  %977 = vpow2.f32 %v602_v63 }
 0x1c1   : > { %v1177_v2 = vpop.eup %975  ;;  %v616_v3 = vmul.f32 1.442695, %v591_v1 }
 0x1c2   : > { %v557_v4 = vpop.xlane.xlu1 %556  ;;  %646 = vadd.xlane.f32.xlu0 %v1177_v2 }
 0x1c3   : > { %979 = vpow2.f32 %v616_v3  ;;  %v585_v5 = vsub.f32 %v518_v29, %v557_v4 }
 0x1c5   : > { %v604_v6 = vmul.f32 1.442695, %v585_v5  ;;  %v1180_v7 = vpop.eup %977 }
 0x1c7   : > { %981 = vpow2.f32 %v604_v6 }
 0x1c9   : > { %v1182_v8 = vpop.eup %979 }
 0x1ca   : > { %v559_v9 = vpop.xlane.xlu2 %558  ;;  %v571_v10 = vpop.xlane.xlu1 %570  ;;  %634 = vadd.xlane.f32.xlu0 %v1180_v7  ;;  %648 = vadd.xlane.f32.xlu1 %v1182_v8 }
 0x1cb   : > { %v592_v11 = vsub.f32 %v1141_v32, %v571_v10  ;;  %v586_v13 = vsub.f32 %v1143_v33, %v559_v9 }
 0x1cd   : > { %v618_v12 = vmul.f32 1.442695, %v592_v11  ;;  %v1188_v14 = vpop.eup %981  ;;  %v606_v17 = vmul.f32 1.442695, %v586_v13 }
 0x1cf   : > { %983 = vpow2.f32 %v618_v12 }
 0x1d2   : > { %v573_v15 = vpop.xlane.xlu2 %572  ;;  %636 = vadd.xlane.f32.xlu1 %v1188_v14 }
 0x1d3   : > { %v593_v16 = vsub.f32 %v1147_v36, %v573_v15 }
 0x1d5   : > { %v620_v18 = vmul.f32 1.442695, %v593_v16  ;;  %v1192_v19 = vpop.eup %983 }
 0x1d6   : > { %v575_v20 = vpop.xlane.xlu0 %574  ;;  %650 = vadd.xlane.f32.xlu2 %v1192_v19 }
 0x1d7   : > { %985 = vpow2.f32 %v620_v18  ;;  %v594_v21 = vsub.f32 %v1150_v38, %v575_v20 }
 0x1d8   : > { %987 = vpow2.f32 %v606_v17 }
 0x1d9   : > { %v622_v22 = vmul.f32 1.442695, %v594_v21 }
 0x1da   : > { %v561_v23 = vpop.xlane.xlu2 %560 }
 0x1db   : > { %989 = vpow2.f32 %v622_v22  ;;  %v587_v24 = vsub.f32 %v1153_v40, %v561_v23 }
 0x1dd   : > { %v1197_v25 = vpop.eup %985  ;;  %v608_v26 = vmul.f32 1.442695, %v587_v24 }
 0x1de   : > { %v1199_v27 = vpop.eup %987  ;;  %652 = vadd.xlane.f32.xlu0 %v1197_v25  ;;  %v563_v28 = vpop.xlane.xlu0 %562 }
 0x1df   : > { %991 = vpow2.f32 %v608_v26  ;;  %638 = vadd.xlane.f32.xlu2 %v1199_v27  ;;  %v588_v29 = vsub.f32 %v1156_v42, %v563_v28 }
 0x1e1   : > { %v1204_v30 = vpop.eup %989  ;;  %v610_v31 = vmul.f32 1.442695, %v588_v29 }
 0x1e2   : > { %v565_v32 = vpop.xlane.xlu1 %564  ;;  %654 = vadd.xlane.f32.xlu1 %v1204_v30 }
 0x1e3   : > { %993 = vpow2.f32 %v610_v31  ;;  %v589_v33 = vsub.f32 %v1159_v44, %v565_v32 }
 0x1e5   : > { %v1208_v34 = vpop.eup %991  ;;  %v612_v35 = vmul.f32 1.442695, %v589_v33 }
 0x1e6   : > { %v579_v36 = vpop.xlane.xlu2 %578  ;;  %640 = vadd.xlane.f32.xlu0 %v1208_v34 }
 0x1e7   : > { %995 = vpow2.f32 %v612_v35  ;;  %v596_v37 = vsub.f32 %v1162_v46, %v579_v36 }
 0x1e9   : > { %v1212_v38 = vpop.eup %993  ;;  %v626_v39 = vmul.f32 1.442695, %v596_v37 }
 0x1ea   : > { %v577_v40 = vpop.xlane.xlu1 %576  ;;  %642 = vadd.xlane.f32.xlu1 %v1212_v38 }
 0x1eb   : > { %997 = vpow2.f32 %v626_v39  ;;  %v595_v41 = vsub.f32 %v1165_v47, %v577_v40 }
 0x1ed   : > { %v1216_v42 = vpop.eup %995  ;;  %v624_v43 = vmul.f32 1.442695, %v595_v41 }
 0x1ee   : > { %644 = vadd.xlane.f32.xlu2 %v1216_v42  ;;  %v581_v44 = vpop.xlane.xlu0 %580 }
 0x1ef   : > { %999 = vpow2.f32 %v624_v43  ;;  %v597_v45 = vsub.f32 %v1168_v49, %v581_v44 }
 0x1f1   : > { %v1220_v46 = vpop.eup %997  ;;  %v628_v48 = vmul.f32 1.442695, %v597_v45 }
 0x1f2   : > { %658 = vadd.xlane.f32.xlu0 %v1220_v46 }
 0x1f3   : > { %1001 = vpow2.f32 %v628_v48 }
 0x1f5   : > { %v1223_v50 = vpop.eup %999 }
 0x1f6   : > { %656 = vadd.xlane.f32.xlu2 %v1223_v50 }
 0x1f9   : > { %v1226_v47 = vpop.eup %1001 }
 0x1fa   : > { %660 = vadd.xlane.f32.xlu1 %v1226_v47 }
 0x229   : > { %v631_v51 = vpop.xlane.xlu1 %630 }
 0x22a   : > { %1003 = vrcp.f32 %v631_v51 }
 0x230   : > { %v1004_v52 = vpop.eup %1003 }
 0x231   : > { %v678_v53 = vmul.f32 %v1004_v52, %v631_v51  ;;  %v633_v54 = vpop.xlane.xlu2 %632 }
 0x232   : > { %1005 = vrcp.f32 %v633_v54 }
 0x233   : > { %v694_v49 = vsub.f32 2.0, %v678_v53 }
 0x235   : > { %v710_v56 = vmul.f32 %v1004_v52, %v694_v49  ;;  %v647_v57 = vpop.xlane.xlu0 %646 }
 0x236   : > { %1007 = vrcp.f32 %v647_v57 }
 0x237   : > { %v726_v58 = vmul.f32 %v1171_v55, %v710_v56 }
 0x238   : > { %v1006_v59 = vpop.eup %1005 }
 0x239   : > { %742 = vst [vmem:[%s1233_s16] sm:$0xff] %v726_v58  ;;  %v679_v60 = vmul.f32 %v1006_v59, %v633_v54 }
 0x23b   : > { %v695_v61 = vsub.f32 2.0, %v679_v60 }
 0x23c   : > { %v1008_v63 = vpop.eup %1007 }
 0x23d   : > { %v711_v0 = vmul.f32 %v1006_v59, %v695_v61  ;;  %v686_v1 = vmul.f32 %v1008_v63, %v647_v57  ;;  %v649_v3 = vpop.xlane.xlu1 %648  ;;  %v635_v4 = vpop.xlane.xlu0 %634 }
 0x23e   : > { %1009 = vrcp.f32 %v649_v3 }
 0x23f   : > { %v727_v5 = vmul.f32 %v1174_v62, %v711_v0  ;;  %v702_v6 = vsub.f32 2.0, %v686_v1  ;;  %1011 = vrcp.f32 %v635_v4 }
 0x241   : > { %743 = vst [vmem:[%s1233_s16 + $0x8] sm:$0xff] %v727_v5  ;;  %v718_v9 = vmul.f32 %v1008_v63, %v702_v6 }
 0x243   : > { %v734_v10 = vmul.f32 %v1177_v2, %v718_v9 }
 0x244   : > { %v1010_v55 = vpop.eup %1009 }
 0x245   : > { %v1012_v11 = vpop.eup %1011  ;;  %750 = vst [vmem:[%s1233_s16 + $0x40] sm:$0xff] %v734_v10  ;;  %v687_v12 = vmul.f32 %v1010_v55, %v649_v3  ;;  %v637_v13 = vpop.xlane.xlu1 %636 }
 0x246   : > { %v680_v15 = vmul.f32 %v1012_v11, %v635_v4  ;;  %1013 = vrcp.f32 %v637_v13 }
 0x247   : > { %v703_v16 = vsub.f32 2.0, %v687_v12 }
 0x248   : > { %v696_v17 = vsub.f32 2.0, %v680_v15 }
 0x249   : > { %v719_v18 = vmul.f32 %v1010_v55, %v703_v16  ;;  %v651_v62 = vpop.xlane.xlu2 %650 }
 0x24a   : > { %v712_v20 = vmul.f32 %v1012_v11, %v696_v17  ;;  %1015 = vrcp.f32 %v651_v62 }
 0x24b   : > { %v735_v21 = vmul.f32 %v1182_v8, %v719_v18 }
 0x24c   : > { %v1014_v22 = vpop.eup %1013  ;;  %v728_v2 = vmul.f32 %v1180_v7, %v712_v20 }
 0x24d   : > { %751 = vst [vmem:[%s1233_s16 + $0x48] sm:$0xff] %v735_v21  ;;  %v681_v23 = vmul.f32 %v1014_v22, %v637_v13 }
 0x24e   : > { %744 = vst [vmem:[%s1233_s16 + $0x10] sm:$0xff] %v728_v2 }
 0x24f   : > { %v697_v24 = vsub.f32 2.0, %v681_v23 }
 0x250   : > { %v1016_v26 = vpop.eup %1015 }
 0x251   : > { %v713_v28 = vmul.f32 %v1014_v22, %v697_v24  ;;  %v653_v29 = vpop.xlane.xlu0 %652  ;;  %v688_v31 = vmul.f32 %v1016_v26, %v651_v62 }
 0x252   : > { %v639_v32 = vpop.xlane.xlu2 %638  ;;  %1017 = vrcp.f32 %v653_v29 }
 0x253   : > { %v729_v33 = vmul.f32 %v1188_v14, %v713_v28  ;;  %1019 = vrcp.f32 %v639_v32  ;;  %v704_v8 = vsub.f32 2.0, %v688_v31 }
 0x255   : > { %745 = vst [vmem:[%s1233_s16 + $0x18] sm:$0xff] %v729_v33  ;;  %v655_v35 = vpop.xlane.xlu1 %654  ;;  %v720_v36 = vmul.f32 %v1016_v26, %v704_v8 }
 0x256   : > { %1021 = vrcp.f32 %v655_v35 }
 0x257   : > { %v736_v37 = vmul.f32 %v1192_v19, %v720_v36 }
 0x258   : > { %v1018_v7 = vpop.eup %1017 }
 0x259   : > { %v1020_v39 = vpop.eup %1019  ;;  %v689_v40 = vmul.f32 %v1018_v7, %v653_v29  ;;  %v641_v41 = vpop.xlane.xlu0 %640  ;;  %752 = vst [vmem:[%s1233_s16 + $0x50] sm:$0xff] %v736_v37 }
 0x25a   : > { %v682_v43 = vmul.f32 %v1020_v39, %v639_v32  ;;  %1023 = vrcp.f32 %v641_v41 }
 0x25b   : > { %v705_v44 = vsub.f32 2.0, %v689_v40 }
 0x25c   : > { %v1022_v45 = vpop.eup %1021  ;;  %v698_v14 = vsub.f32 2.0, %v682_v43 }
 0x25d   : > { %v721_v48 = vmul.f32 %v1018_v7, %v705_v44  ;;  %v690_v51 = vmul.f32 %v1022_v45, %v655_v35  ;;  %v643_v52 = vpop.xlane.xlu1 %642 }
 0x25e   : > { %v714_v53 = vmul.f32 %v1020_v39, %v698_v14  ;;  %1025 = vrcp.f32 %v643_v52 }
 0x25f   : > { %v737_v54 = vmul.f32 %v1197_v25, %v721_v48  ;;  %v706_v19 = vsub.f32 2.0, %v690_v51 }
 0x260   : > { %v1024_v49 = vpop.eup %1023  ;;  %v730_v56 = vmul.f32 %v1199_v27, %v714_v53 }
 0x261   : > { %753 = vst [vmem:[%s1233_s16 + $0x58] sm:$0xff] %v737_v54  ;;  %v722_v57 = vmul.f32 %v1022_v45, %v706_v19  ;;  %v683_v58 = vmul.f32 %v1024_v49, %v641_v41  ;;  %v645_v59 = vpop.xlane.xlu2 %644 }
 0x262   : > { %746 = vst [vmem:[%s1233_s16 + $0x20] sm:$0xff] %v730_v56  ;;  %1027 = vrcp.f32 %v645_v59 }
 0x263   : > { %v738_v60 = vmul.f32 %v1204_v30, %v722_v57  ;;  %v699_v61 = vsub.f32 2.0, %v683_v58 }
 0x264   : > { %v1026_v63 = vpop.eup %1025 }
 0x265   : > { %754 = vst [vmem:[%s1233_s16 + $0x60] sm:$0xff] %v738_v60  ;;  %v715_v0 = vmul.f32 %v1024_v49, %v699_v61  ;;  %v684_v1 = vmul.f32 %v1026_v63, %v643_v52  ;;  %v659_v25 = vpop.xlane.xlu0 %658 }
 0x266   : > { %1029 = vrcp.f32 %v659_v25 }
 0x267   : > { %v731_v3 = vmul.f32 %v1208_v34, %v715_v0  ;;  %v700_v27 = vsub.f32 2.0, %v684_v1 }
 0x268   : > { %v1028_v4 = vpop.eup %1027 }
 0x269   : > { %747 = vst [vmem:[%s1233_s16 + $0x28] sm:$0xff] %v731_v3  ;;  %v716_v5 = vmul.f32 %v1026_v63, %v700_v27  ;;  %v685_v6 = vmul.f32 %v1028_v4, %v645_v59  ;;  %v657_v9 = vpop.xlane.xlu2 %656 }
 0x26a   : > { %1031 = vrcp.f32 %v657_v9 }
 0x26b   : > { %v732_v30 = vmul.f32 %v1212_v38, %v716_v5  ;;  %v701_v10 = vsub.f32 2.0, %v685_v6 }
 0x26c   : > { %v1030_v55 = vpop.eup %1029 }
 0x26d   : > { %748 = vst [vmem:[%s1233_s16 + $0x30] sm:$0xff] %v732_v30  ;;  %v717_v11 = vmul.f32 %v1028_v4, %v701_v10  ;;  %v692_v12 = vmul.f32 %v1030_v55, %v659_v25  ;;  %v661_v13 = vpop.xlane.xlu1 %660 }
 0x26e   : > { %1033 = vrcp.f32 %v661_v13 }
 0x26f   : > { %v733_v34 = vmul.f32 %v1216_v42, %v717_v11  ;;  %v708_v15 = vsub.f32 2.0, %v692_v12 }
 0x270   : > { %v1032_v16 = vpop.eup %1031 }
 0x271   : > { %749 = vst [vmem:[%s1233_s16 + $0x38] sm:$0xff] %v733_v34  ;;  %v724_v17 = vmul.f32 %v1030_v55, %v708_v15  ;;  %v691_v18 = vmul.f32 %v1032_v16, %v657_v9 }
 0x273   : > { %v740_v20 = vmul.f32 %v1220_v46, %v724_v17  ;;  %v707_v38 = vsub.f32 2.0, %v691_v18 }
 0x274   : > { %v1034_v62 = vpop.eup %1033 }
 0x275   : > { %756 = vst [vmem:[%s1233_s16 + $0x70] sm:$0xff] %v740_v20  ;;  %v723_v21 = vmul.f32 %v1032_v16, %v707_v38  ;;  %v693_v22 = vmul.f32 %v1034_v62, %v661_v13 }
 0x277   : > { %v739_v2 = vmul.f32 %v1223_v50, %v723_v21  ;;  %v709_v23 = vsub.f32 2.0, %v693_v22 }
 0x279   : > { %755 = vst [vmem:[%s1233_s16 + $0x68] sm:$0xff] %v739_v2  ;;  %v725_v24 = vmul.f32 %v1034_v62, %v709_v23 }
 0x27b   : > { %v741_v42 = vmul.f32 %v1226_v47, %v725_v24 }
 0x27d   : > { %757 = vst [vmem:[%s1233_s16 + $0x78] sm:$0xff] %v741_v42 }
 0x27e PF: > { %s15_s18 = sadd.s32 1, %s1041_s18  }
 0x27f   : > { %p12_p4 = scmp.ge.s32.totalorder %s15_s18, 4  }
 0x281   :  { %14 = sbr.rel (!%p12_p4) target bundleno = 1 (0x1), region = 70 }

</bundles_post_ra>
